<compile_context>
chip_gen: v7x
topology: tpu7x:2x2x1
jax: 0.10.0
libtpu: 0.0.40
codegen_flags: <defaults>
</compile_context>

<pallas_src>
import jax
import jax.numpy as jnp
from jax.experimental import pallas as pl
from jax.experimental.pallas import tpu as pltpu


def ffm_kernel(left_ref, right_ref, lin_ref, bias_ref, out_ref):
    """
    left_ref, right_ref : (TB, P*E) bf16  packed pair operands (lane axis = P*E, lane-dense)
    lin_ref             : (TB, F)   bf16  per-(sample, field) linear weights
    bias_ref            : (1,)      f32   linear bias, resident in SMEM
    out_ref             : (TB, 1)   f32   sigmoid(linear + ffm_term)
    """
    l = left_ref[...].astype(jnp.float32)                     # upcast on load (v5e-safe)
    r = right_ref[...].astype(jnp.float32)
    prod = l * r                                              # VPU elementwise, f32 accumulate
    ffm = jnp.sum(prod, axis=-1, keepdims=True)               # ONE lane reduce per tile (XLU)
    lin = jnp.sum(lin_ref[...].astype(jnp.float32), axis=-1, keepdims=True)
    logits = lin + ffm + bias_ref[0]                          # scalar bias from SMEM
    out_ref[...] = jax.nn.sigmoid(logits)                     # EUP transcendental


def _round_up(x, m):
    return ((x + m - 1) // m) * m


def _choose_block_b(bytes_per_sample, vmem_budget_bytes=8 * 1024 * 1024):
    # Inputs are double-buffered by the pipeline => ~2x the live tile bytes. Stay well
    # under the scoped-VMEM default so the same tile size also fits v7x (64 MiB physical).
    tb = vmem_budget_bytes // max(1, 2 * bytes_per_sample)
    tb = (tb // 8) * 8
    return int(max(8, min(1024, tb)))


def ffm_forward(x_idx, emb_tables, lin_w, bias, offsets, *, block_b=None):
    """
    x_idx      : (B, F) int32                      raw per-field categorical indices
    emb_tables : (F, sum(field_dims), E) bf16/f32  one embedding table per field
    lin_w      : (sum(field_dims), 1)    bf16/f32
    bias       : (1,) f32
    offsets    : (F,) int32                        cumulative field offsets
    returns    : (B,) f32
    """
    B, F = x_idx.shape
    n_tables, total_dims, E = emb_tables.shape
    assert n_tables == F

    idx = (x_idx + offsets[None, :]).astype(jnp.int32)        # (B, F) global row indices

    # Off-diagonal pair index lists (i < j), matching the PyTorch double loop order.
    pair_i = [i for i in range(F - 1) for j in range(i + 1, F)]
    pair_j = [j for i in range(F - 1) for j in range(i + 1, F)]
    pi = jnp.array(pair_i, dtype=jnp.int32)
    pj = jnp.array(pair_j, dtype=jnp.int32)
    P = len(pair_i)

    # Gather exactly the operands used by the pair products (no diagonal waste) straight
    # into the (B, P*E) lane-dense layout — no transpose of a big activation tensor.
    flat_tables = emb_tables.reshape(F * total_dims, E)
    left_idx = pj[None, :] * total_dims + idx[:, pi]          # (B, P): emb[j][idx[:, i]]
    right_idx = pi[None, :] * total_dims + idx[:, pj]         # (B, P): emb[i][idx[:, j]]
    left = jnp.take(flat_tables, left_idx, axis=0).reshape(B, P * E)
    right = jnp.take(flat_tables, right_idx, axis=0).reshape(B, P * E)

    lin_vals = jnp.take(lin_w[:, 0], idx, axis=0)             # (B, F), storage dtype
    bias_s = jnp.reshape(bias, (1,)).astype(jnp.float32)      # SMEM scalar

    itemsize = jnp.dtype(emb_tables.dtype).itemsize
    bytes_per_sample = 2 * P * E * itemsize + F * itemsize + 4
    if block_b is None:
        block_b = _choose_block_b(bytes_per_sample)
    tb = min(_round_up(block_b, 8), _round_up(B, 8))          # sublane-aligned batch tile
    bp = _round_up(B, tb)
    if bp != B:                                               # pad tail tile (sliced off below)
        pad = bp - B
        left = jnp.pad(left, ((0, pad), (0, 0)))
        right = jnp.pad(right, ((0, pad), (0, 0)))
        lin_vals = jnp.pad(lin_vals, ((0, pad), (0, 0)))

    out = pl.pallas_call(
        ffm_kernel,
        out_shape=jax.ShapeDtypeStruct((bp, 1), jnp.float32),
        grid=(bp // tb,),
        in_specs=[
            pl.BlockSpec((tb, P * E), lambda b: (b, 0)),
            pl.BlockSpec((tb, P * E), lambda b: (b, 0)),
            pl.BlockSpec((tb, F), lambda b: (b, 0)),
            pl.BlockSpec(memory_space=pltpu.MemorySpace.SMEM),   # scalar bias in SMEM
        ],
        out_specs=pl.BlockSpec((tb, 1), lambda b: (b, 0)),
        compiler_params=pltpu.CompilerParams(
            dimension_semantics=("parallel",)),                  # megacore batch split on v7x
    )(left, right, lin_vals, bias_s)

    return out[:B, 0]                                         # matches torch .squeeze(1)


def ffm_reference(x_idx, emb_tables, lin_w, bias, offsets):
    """Pure-JAX reference mirroring the PyTorch forward exactly (f32 compute)."""
    B, F = x_idx.shape
    idx = x_idx + offsets[None, :]
    emb = emb_tables.astype(jnp.float32)
    xs = [jnp.take(emb[f], idx, axis=0) for f in range(F)]    # each (B, F, E)
    pair_terms = []
    for i in range(F - 1):
        for j in range(i + 1, F):
            pair_terms.append(xs[j][:, i] * xs[i][:, j])
    ix = jnp.stack(pair_terms, axis=1)                        # (B, P, E)
    ffm_term = jnp.sum(jnp.sum(ix, axis=1), axis=1, keepdims=True)        # (B, 1)
    lin = jnp.sum(jnp.take(lin_w.astype(jnp.float32), idx, axis=0), axis=1) + bias
    return jax.nn.sigmoid((lin + ffm_term)[:, 0])             # (B,)


if __name__ == "__main__":
    # Small synthetic config consistent with the module's forward:
    # x is a Long tensor of shape (batch_size, num_fields).
    field_dims = (10, 7, 5, 3)
    num_fields = len(field_dims)
    embed_dim = 32
    batch = 16
    total_dims = sum(field_dims)

    key = jax.random.PRNGKey(0)
    k_emb, k_lin, k_x = jax.random.split(key, 3)

    # FFM embeddings: xavier-uniform-ish, one table per field, stored in bf16.
    limit = (6.0 / (total_dims + embed_dim)) ** 0.5
    emb_tables = jax.random.uniform(
        k_emb, (num_fields, total_dims, embed_dim),
        minval=-limit, maxval=limit, dtype=jnp.float32).astype(jnp.bfloat16)

    # FeaturesLinear: embedding weights (sum(field_dims), 1) + scalar bias.
    lin_w = (0.01 * jax.random.normal(k_lin, (total_dims, 1), dtype=jnp.float32)
             ).astype(jnp.bfloat16)
    bias = jnp.zeros((1,), dtype=jnp.float32)

    offsets = jnp.array(
        [0] + list(jnp.cumsum(jnp.array(field_dims))[:-1]), dtype=jnp.int32)

    # Deterministic per-field categorical indices within each field's cardinality.
    x_keys = jax.random.split(k_x, num_fields)
    x = jnp.stack(
        [jax.random.randint(x_keys[f], (batch,), 0, field_dims[f], dtype=jnp.int32)
         for f in range(num_fields)],
        axis=1)                                               # (batch, num_fields) int32

    # block_b=8 at this toy size exercises a multi-step batch grid (2 tiles).
    out = ffm_forward(x, emb_tables, lin_w, bias, offsets, block_b=8)
    out = jax.block_until_ready(out)

    ref = ffm_reference(x, emb_tables, lin_w, bias, offsets)
    assert out.shape == (batch,)
    assert jnp.allclose(out, ref, atol=2e-5, rtol=2e-5), (out, ref)

    print("KERNEL_OK")
</pallas_src>

<mosaic_0001>
module attributes {stable_mosaic.version = 11 : i64} {
  func.func @ffm_kernel(%arg0: i32, %arg1: memref<8x192xbf16, #tpu.memory_space<vmem>>, %arg2: memref<8x192xbf16, #tpu.memory_space<vmem>>, %arg3: memref<8x4xbf16, #tpu.memory_space<vmem>>, %arg4: memref<1xf32, #tpu.memory_space<smem>>, %arg5: memref<8x1xf32, #tpu.memory_space<vmem>>) attributes {dimension_semantics = [#tpu.dimension_semantics<parallel>], iteration_bounds = array<i64: 2>, scalar_prefetch = 0 : i64, scratch_operands = 0 : i64, tpu.core_type = #tpu.core_type<tc>, window_params = [{transform_indices = @transform_0, window_bounds = array<i64: 8, 192>}, {transform_indices = @transform_1, window_bounds = array<i64: 8, 192>}, {transform_indices = @transform_2, window_bounds = array<i64: 8, 4>}, {transform_indices = @transform_3, window_bounds = array<i64: 1>}, {transform_indices = @transform_4, window_bounds = array<i64: 8, 1>}]} {
    %c0 = arith.constant 0 : index
    %c0_0 = arith.constant 0 : index
    %0 = vector.load %arg1[%c0, %c0_0] : memref<8x192xbf16, #tpu.memory_space<vmem>>, vector<8x192xbf16>
    %1 = arith.extf %0 : vector<8x192xbf16> to vector<8x192xf32>
    %c0_1 = arith.constant 0 : index
    %c0_2 = arith.constant 0 : index
    %2 = vector.load %arg2[%c0_1, %c0_2] : memref<8x192xbf16, #tpu.memory_space<vmem>>, vector<8x192xbf16>
    %3 = arith.extf %2 : vector<8x192xbf16> to vector<8x192xf32>
    %4 = arith.mulf %1, %3 : vector<8x192xf32>
    %cst = arith.constant dense<0.000000e+00> : vector<8xf32>
    %5 = vector.multi_reduction <add>, %4, %cst [1] : vector<8x192xf32> to vector<8xf32>
    %6 = vector.shape_cast %5 : vector<8xf32> to vector<8x1xf32>
    %c0_3 = arith.constant 0 : index
    %c0_4 = arith.constant 0 : index
    %7 = vector.load %arg3[%c0_3, %c0_4] : memref<8x4xbf16, #tpu.memory_space<vmem>>, vector<8x4xbf16>
    %8 = arith.extf %7 : vector<8x4xbf16> to vector<8x4xf32>
    %cst_5 = arith.constant dense<0.000000e+00> : vector<8xf32>
    %9 = vector.multi_reduction <add>, %8, %cst_5 [1] : vector<8x4xf32> to vector<8xf32>
    %10 = vector.shape_cast %9 : vector<8xf32> to vector<8x1xf32>
    %11 = arith.addf %10, %6 : vector<8x1xf32>
    %c0_6 = arith.constant 0 : index
    %12 = memref.load %arg4[%c0_6] : memref<1xf32, #tpu.memory_space<smem>>
    %13 = vector.broadcast %12 : f32 to vector<8x1xf32>
    %14 = arith.addf %11, %13 : vector<8x1xf32>
    %15 = arith.negf %14 : vector<8x1xf32>
    %16 = math.exp %15 : vector<8x1xf32>
    %cst_7 = arith.constant 1.000000e+00 : f32
    %17 = vector.broadcast %cst_7 : f32 to vector<8x1xf32>
    %18 = arith.addf %17, %16 : vector<8x1xf32>
    %19 = arith.divf %17, %18 : vector<8x1xf32>
    %c0_8 = arith.constant 0 : index
    %c0_9 = arith.constant 0 : index
    %20 = vector.load %arg5[%c0_8, %c0_9] : memref<8x1xf32, #tpu.memory_space<vmem>>, vector<8x1xf32>
    tpu.vector_store %arg5[%c0_8, %c0_9], %19 {strides = array<i32>} : memref<8x1xf32, #tpu.memory_space<vmem>>, vector<8x1xf32>,
    return
  }
  func.func @transform_0(%arg0: i32) -> (i32, i32) {
    %c0_i32 = arith.constant 0 : i32
    %c0_i32_0 = arith.constant 0 : i32
    return %arg0, %c0_i32 : i32, i32
  }
  func.func @transform_1(%arg0: i32) -> (i32, i32) {
    %c0_i32 = arith.constant 0 : i32
    %c0_i32_0 = arith.constant 0 : i32
    return %arg0, %c0_i32 : i32, i32
  }
  func.func @transform_2(%arg0: i32) -> (i32, i32) {
    %c0_i32 = arith.constant 0 : i32
    %c0_i32_0 = arith.constant 0 : i32
    return %arg0, %c0_i32 : i32, i32
  }
  func.func @transform_3(%arg0: i32) -> i32 {
    %c0_i32 = arith.constant 0 : i32
    %c0_i32_0 = arith.constant 0 : i32
    return %c0_i32 : i32
  }
  func.func @transform_4(%arg0: i32) -> (i32, i32) {
    %c0_i32 = arith.constant 0 : i32
    %c0_i32_0 = arith.constant 0 : i32
    return %arg0, %c0_i32 : i32, i32
  }
}

</mosaic_0001>

<bundles_post_ra>
// kernel: tpu_custom_call.1
= control target key start
LH: loop header
LB: loop body
LE: loop exit
PB: predicated region body
PF: predicated region fallthrough
CT: control target
= control target key end

     0   :  { %s648_s0 = inlined_call_operand.hbm [shape: bf16[16,192], index: 0, kind: input, shape index: {}]   ;;  %s649_s1 = inlined_call_operand.vmem [shape: bf16[16,192], index: 1, kind: input, shape index: {}]   ;;  %s650_s2 = inlined_call_operand.vmem [shape: bf16[16,4], index: 2, kind: input, shape index: {}]   ;;  %s651_s3 = inlined_call_operand.<no memory space> [shape: f32[1], index: 3, kind: input, shape index: {}]   ;;  %s652_s4 = inlined_call_operand.vmem [shape: f32[16,1], index: 4, kind: output, shape index: {}]  }
   0x1   :  { %9 = sst [smem:[#allocation2]] %s651_s3 }
   0x2   :  { %10 = vsyncpa [#allocation4], 0 }
   0x3   :  { %12 = vsyncpa [#allocation4 + $0x1], 0  ;;  %s527_s17 = smov 0   ;;  %s529_s18 = smov 0  }
   0x4   :  { %s531_s19 = smov 0   ;;  %s533_s20 = smov 0  }
   0x5 LB: > { %s546_s3 = sadd.s32 4294967295, %s496_s20   ;;  %s549_s21 = sadd.s32 1, %s496_s20   ;;  %s496_s20 = sphi %s533_s20, %s660_s20   ;;  %s492_s19 = sphi %s531_s19, %s659_s19   ;;  %s488_s18 = sphi %s529_s18, %s658_s18   ;;  %s484_s17 = sphi %s527_s17, %s657_s17  }
   0x6   : > { %s22_s22 = ssub.s32 %s496_s20, %s549_s21  ;;  %s25_s23 = sadd.s32 1, %s492_s19 }
   0x7   : > { %p23_p0 = scmp.eq.s32.totalorder %s22_s22, 0  ;;  %p32_p1 = scmp.ne.s32.totalorder %s492_s19, %s488_s18 }
   0x8   : > { %p33_p2 = scmp.eq.s32.totalorder %s496_s20, 0  ;;  %p38_p3 = scmp.ne.s32.totalorder %s488_s18, %s484_s17 }
   0x9   : > { %s559_s24 = scalar_select %p23_p0, %s492_s19, %s25_s23  }
   0xa   : > { %p34_p4 = por %p33_p2, %p32_p1  ;;  %p39_p5 = scmp.eq.s32.totalorder %s546_s3, 0 }
   0xb   : > { %p395_p6 = scmp.lt.s32.totalorder %s496_s20, 2  ;;  %s164_s26 = sand.u32 1, %s492_s19  }
   0xc   : > { %p563_p7 = por %p39_p5, %p38_p3  ;;  %s375_s27 = sshll.u32 %s164_s26, 3 }
   0xd   : > { %s387_s28 = sshll.u32 %s496_s20, 7  ;;  %s168_s6 = scalar_lea.vmem [#allocation3], %s375_s27 }
   0xe   : > { %s572_s5 = scalar_lea.hbm %s648_s0, %s387_s28  ;;  %s176_s7 = sshll.u32 %s168_s6, 4  ;;  %s574_s7 = int_to_ptr.vmem [resolvable:$true] %s176_s7 }
   0xf   : > { %p576_p8 = pnand %p395_p6, %p34_p4  ;;  %s165_s9 = scalar_lea.sflag [#allocation4], %s164_s26 }
  0x10   : > { %s432_s10 = scalar_lea.hbm %s572_s5, 128  ;;  %s437_s13 = scalar_lea.hbm %s648_s0, 256 }
  0x11   : > { %p433_p11 = scmp.ne.s32.totalorder %s572_s5, %s432_s10  ;;  %p434_p12 = pneg %p576_p8 }
  0x12   : > { %p438_p1 = scmp.lt.u32.totalorder %s572_s5, %s648_s0  ;;  %p439_p2 = scmp.lt.u32.totalorder %s437_s13, %s432_s10 }
  0x13   : > { %p435_p13 = pnand %p434_p12, %p433_p11  ;;  %p441_p4 = scmp.lt.u32.totalorder %s432_s10, %s572_s5 }
  0x14   : > { %p440_p3 = por %p439_p2, %p438_p1 }
  0x15   : > { %p436_p0 = pneg %p435_p13 }
  0x16   : > { %p442_p5 = por %p441_p4, %p440_p3 }
  0x18   : > { %p443_p6 = pnand %p442_p5, %p436_p0 }
  0x1a   : > { %446 = shalt.err (!%p443_p6)
}
  0x1b   : > { %s447_s16 = scalar_lea.vmem %s574_s7, 128  ;;  %s498_s17 = smov [#allocation3]  }
  0x1c   : > { %p448_p11 = scmp.ne.s32.totalorder %s574_s7, %s447_s16  ;;  %s452_s22 = sshll.u32 %s498_s17, 4  ;;  %s453_s22 = int_to_ptr.vmem [resolvable:$false] %s452_s22 }
  0x1d   : > { %s454_s23 = scalar_lea.vmem %s453_s22, 256  ;;  %p455_p10 = scmp.lt.s32.totalorder %s574_s7, %s453_s22 }
  0x1e   : > { %p450_p13 = pnand %p448_p11, %p434_p12  ;;  %p456_p1 = scmp.lt.s32.totalorder %s454_s23, %s447_s16 }
  0x20   : > { %p451_p9 = pneg %p450_p13  ;;  %p457_p2 = por %p456_p1, %p455_p10 }
  0x22   : > { %p458_p3 = pnand %p457_p2, %p451_p9 }
  0x24   : > { %461 = shalt.err (!%p458_p3)
}
  0x25   : > { %394 = dma.hbm_to_vmem [thread:$0]  (!%p576_p8), %s572_s5, 128, %s574_s7, %s165_s9  }
  0x26   : > { %p655_p0 = scmp.lt.s32.totalorder %s496_s20, 3  ;;  %p656_p4 = scmp.ge.s32.totalorder %s496_s20, 1 }
  0x28   : > { %p197_p12 = pnand %p656_p4, %p655_p0 }
  0x29   : > { %s202_s26 = sand.u32 (!%p197_p12), 1, %s488_s18  }
  0x2a   : > { %200 = sbr.rel (%p197_p12) target bundleno = 240 (0xf0), region = 36  ;;  %s379_s27 = sshll.u32 (!%p197_p12), %s202_s26, 3 }
  0x2b   : > { %s203_s28 = scalar_lea.sflag (!%p197_p12), [#allocation4], %s202_s26  ;;  %s206_s29 = scalar_lea.vmem (!%p197_p12), [#allocation3], %s379_s27 }
  0x31   : > { %479 = dma.done.wait (%p563_p7), %s203_s28, 128  }
  0x32   : > { %481 = vsyncadd (%p563_p7), %s203_s28, 4294967168  ;;  %p239_p9 = scmp.lt.s32.totalorder %s546_s3, 1  ;;  %v252_v0 = vld [vmem:[%s206_s29] sm:$0xff]  ;;  %vm260_vm0 = vcmask 523264   ;;  %vm267_vm1 = vcmask 31744   ;;  %s272_s10 = sld [smem:[#allocation2]] }
  0x33   : > { %v253_v2 = vunpack.c.l.bf16 %v252_v0  ;;  %v254_v3 = vunpack.c.h.bf16 %v252_v0  ;;  %vm281_vm2 = vcmask 7168  }
  0x34   : > { %s662_s3 = smov (!%p239_p9, %s546_s3), 1 }
  0x35   : > { %s388_s20 = sshll.u32 %s662_s3, 3  ;;  %s382_s30 = sshll.u32 %s662_s3, 2 }
  0x36   : > { %s243_s7 = scalar_lea.vmem %s649_s1, %s388_s20  ;;  %s247_s25 = scalar_lea.vmem %s650_s2, %s382_s30 }
  0x37   : > { %v255_v1 = vld [vmem:[%s243_s7] sm:$0xff]  ;;  %s251_s13 = scalar_lea.vmem %s652_s4, %s388_s20 }
  0x38   : > { %v256_v4 = vunpack.c.l.bf16 %v255_v1  ;;  %v257_v5 = vunpack.c.h.bf16 %v255_v1  ;;  %v265_v6 = vld [vmem:[%s247_s25] sm:$0xf]  ;;  %v273_v14 = vstv %s272_s10 }
  0x39   : > { %v266_v10 = vunpack.c.l.bf16 %v265_v6 }
  0x3a   : > { %v258_v7 = vmul.f32 %v256_v4, %v253_v2  ;;  %v259_v8 = vmul.f32 %v257_v5, %v254_v3 }
  0x3b   : > { %v268_v12 = vsel %vm267_vm1, %v266_v10, 0.0 }
  0x3c   : > { %v261_v9 = vsel %vm260_vm0, %v259_v8, 0.0 }
  0x3d   : > { %v262_v11 = vadd.f32 %v261_v9, %v258_v7 }
  0x3f   : > { %263 = vadd.xlane.f32.xlu0 %v262_v11 }
  0x43   : > { %269 = vadd.xlane.f32.xlu0 %v268_v12 }
  0xcc   : > { %v264_v13 = vpop.xlane.xlu0 %263 }
  0xd0   : > { %v270_v15 = vpop.xlane.xlu0 %269 }
  0xd1   : > { %v271_v16 = vadd.f32 %v270_v15, %v264_v13 }
  0xd3   : > { %v274_v17 = vadd.f32 %v273_v14, %v271_v16 }
  0xd5   : > { %v384_v18 = vmul.f32 -1.442695, %v274_v17 }
  0xd7   : > { %428 = vpow2.f32 %v384_v18 }
  0xe1   : > { %v429_v19 = vpop.eup %428 }
  0xe2   : > { %v278_v20 = vadd.f32 1.0, %v429_v19 }
  0xe4   : > { %430 = vrcp.f32 %v278_v20 }
  0xee   : > { %v431_v21 = vpop.eup %430 }
  0xef   : > { %282 = vst.msk [vmem:[%s251_s13] sm:$0xff] %vm281_vm2, %v431_v21 }
  0xf0 PF: > { %p15_p7 = scmp.ge.s32.totalorder %s549_s21, 4   ;;  %s657_s17 = smov %s488_s18 }
  0xf1   : > { %s658_s18 = smov %s492_s19  ;;  %s659_s19 = smov %s559_s24 }
  0xf2   : > { %s660_s20 = smov %s549_s21  ;;  %17 = sbr.rel (!%p15_p7) target bundleno = 5 (0x5), region = 82 }
  0xf9   :  { %302 = vsyncpa [#allocation4], 1 }
  0xfa   :  { %304 = vsyncpa [#allocation4 + $0x1], 1 }

</bundles_post_ra>
